<compile_context>
chip_gen: v5e
topology: v5e:2x2
jax: 0.10.0
libtpu: 0.0.40
codegen_flags: <defaults>
</compile_context>

<pallas_src>
import jax
import jax.numpy as jnp
from jax import lax
from jax.experimental import pallas as pl
from jax.experimental.pallas import tpu as pltpu

EPS = 1e-5


# ----------------------------- glue: im2col ---------------------------------
def _im2col_3x3x3(x, dilation):
    """x: (N, C, D, H, W) -> (N, 27*C, D*H*W); tap t = kd*9+kh*3+kw occupies
    rows [t*C, (t+1)*C)."""
    N, C, D, H, W = x.shape
    d = dilation
    xp = jnp.pad(x, ((0, 0), (0, 0), (d, d), (d, d), (d, d)))
    cols = []
    for kd in range(3):
        for kh in range(3):
            for kw in range(3):
                cols.append(
                    xp[:, :, kd * d:kd * d + D, kh * d:kh * d + H, kw * d:kw * d + W]
                    .reshape(N, C, D * H * W))
    return jnp.concatenate(cols, axis=1)


# --------------------------- Pallas kernel body ------------------------------
def _make_block_kernel(cout, cin, s_tile, n_s_tiles, has_conv_shortcut):
    def _instnorm(rows, g, b):
        # Two-pass stats (no E[x^2]-E[x]^2 cancellation), gamma/beta folded into
        # one scale/shift.  Reduction is over the lane axis (S) -> XLU.
        mean = jnp.mean(rows, axis=-1, keepdims=True)
        var = jnp.mean((rows - mean) ** 2, axis=-1, keepdims=True)
        scale = g * lax.rsqrt(var + EPS)
        return rows * scale + (b - mean * scale)

    def kernel(col_ref, w_ref, g_ref, b_ref, o_ref, acc_ref):
        j = pl.program_id(1)
        off = pl.multiple_of(j * s_tile, s_tile)

        # Fused conv for this spatial tile: (M, K) @ (K, s_tile) on the MXU,
        # f32 accumulation.  Conv biases omitted (cancel under InstanceNorm).
        conv = jnp.dot(w_ref[...], col_ref[...],
                       preferred_element_type=jnp.float32)
        if has_conv_shortcut:
            acc_ref[:, pl.ds(off, s_tile)] = conv
        else:
            acc_ref[0:cout, pl.ds(off, s_tile)] = conv
            # identity shortcut == centre tap (kd=kh=kw=1 -> t=13) of the cols
            acc_ref[cout:cout + cin, pl.ds(off, s_tile)] = (
                col_ref[13 * cin:14 * cin, :].astype(jnp.float32))

        # Finalize on the last spatial tile: InstanceNorm + shortcut + ReLU,
        # single lane-dense (Cout, S) store.
        @pl.when(j == n_s_tiles - 1)
        def _():
            main = _instnorm(acc_ref[0:cout, :], g_ref[0:cout, :], b_ref[0:cout, :])
            if has_conv_shortcut:
                sc = _instnorm(acc_ref[cout:, :], g_ref[cout:, :], b_ref[cout:, :])
            else:
                sc = acc_ref[cout:cout + cin, :]
            o_ref[...] = jnp.maximum(main + sc, 0.0)

    return kernel


# ------------------------ weight / affine preparation ------------------------
def _prep_block_mats(p):
    """Returns (w_mat (M, K), gamma (M, 1), beta (M, 1)) with the shortcut conv
    fused along the output dim when present."""
    w = p['w']                                            # (27, Cin, Cout)
    cin, cout = w.shape[1], w.shape[2]
    w_main = w.reshape(27 * cin, cout).T                  # (Cout, 27*Cin)
    g = p['gamma'].reshape(cout, 1)
    b = p['beta'].reshape(cout, 1)
    if 'w_sc' not in p:
        return w_main, g, b
    w_sc = p['w_sc'].reshape(27 * cin, cout).T
    if p['dilation'] == 1:
        # shortcut conv (pad=1, dil=1) sees exactly the same columns
        w_mat = jnp.concatenate([w_main, w_sc], axis=0)   # (2*Cout, 27*Cin)
    else:
        # block-diagonal over concat(dilated cols, dil=1 cols)
        z = jnp.zeros_like(w_main)
        w_mat = jnp.block([[w_main, z], [z, w_sc]])       # (2*Cout, 54*Cin)
    g = jnp.concatenate([g, p['gamma_sc'].reshape(cout, 1)], axis=0)
    b = jnp.concatenate([b, p['beta_sc'].reshape(cout, 1)], axis=0)
    return w_mat, g, b


# --------------------------- per-block pallas_call ---------------------------
def _pick_s_tile(S, cap=2048):
    """Largest multiple-of-128 divisor of S not exceeding `cap` (else S)."""
    if S <= cap:
        return S
    best = None
    t = 128
    while t <= cap:
        if S % t == 0:
            best = t
        t += 128
    return best if best is not None else S


def _apply_block(x, p, s_tile=None, matmul_dtype=jnp.float32):
    N, Cin, D, H, W = x.shape
    S = D * H * W
    Cout = p['w'].shape[2]
    has_sc = 'w_sc' in p
    dil = p['dilation']

    cols = _im2col_3x3x3(x, dil)                              # (N, 27*Cin, S)
    if has_sc and dil != 1:
        # shortcut conv uses dilation-1 columns -> concatenate along K
        cols = jnp.concatenate([cols, _im2col_3x3x3(x, 1)], axis=1)
    K = cols.shape[1]

    w_mat, gamma, beta = _prep_block_mats(p)
    M = w_mat.shape[0]

    cols = cols.astype(matmul_dtype)
    w_mat = w_mat.astype(matmul_dtype)

    if s_tile is None:
        s_tile = _pick_s_tile(S)
    if S % s_tile != 0 or (s_tile != S and s_tile % 128 != 0):
        s_tile = S
    n_tiles = S // s_tile

    col_spec = pl.BlockSpec((pl.Squeezed(), K, s_tile), lambda n, j: (n, 0, j))
    w_spec = pl.BlockSpec((M, K), lambda n, j: (0, 0))
    vec_spec = pl.BlockSpec((M, 1), lambda n, j: (0, 0))
    out_spec = pl.BlockSpec((pl.Squeezed(), Cout, S), lambda n, j: (n, 0, 0))

    itemsize = jnp.dtype(matmul_dtype).itemsize
    vmem_need = (2 * K * s_tile * itemsize      # double-buffered column tile
                 + 2 * Cout * S * 4             # revisited output block
                 + 2 * Cout * S * 4             # f32 accumulator scratch
                 + 2 * M * K * itemsize
                 + (2 << 20))                   # headroom (padding, internals)
    vmem_limit = int(min(max(2 * vmem_need, 24 << 20), 48 << 20))

    flops = 2 * N * S * K * M + 12 * N * S * Cout
    bytes_accessed = int(cols.size) * itemsize + int(w_mat.size) * itemsize \
        + N * Cout * S * 4

    out = pl.pallas_call(
        _make_block_kernel(Cout, Cin, s_tile, n_tiles, has_sc),
        out_shape=jax.ShapeDtypeStruct((N, Cout, S), jnp.float32),
        grid=(N, n_tiles),
        in_specs=[col_spec, w_spec, vec_spec, vec_spec],
        out_specs=out_spec,
        scratch_shapes=[pltpu.VMEM((2 * Cout, S), jnp.float32)],
        compiler_params=pltpu.CompilerParams(
            dimension_semantics=("parallel", "arbitrary"),
            vmem_limit_bytes=vmem_limit),
        cost_estimate=pl.CostEstimate(flops=flops, transcendentals=4 * Cout,
                                      bytes_accessed=bytes_accessed),
    )(cols, w_mat, gamma, beta)
    return out.reshape(N, Cout, D, H, W)


# ------------------------------ module wrapper --------------------------------
def dilated_block_forward(x_ncdhw, params_list, s_tile=None,
                          matmul_dtype=jnp.float32):
    """DilatedBlock.forward. x: (N, Cin, D, H, W) f32 -> (N, Cout, D, H, W)."""
    x = x_ncdhw.astype(jnp.float32)
    for p in params_list:
        x = _apply_block(x, p, s_tile=s_tile, matmul_dtype=matmul_dtype)
    return x


# ------------------------- deterministic parameters ---------------------------
def init_block_params(key, in_channels, out_channels, dilation_lists=(1, 2, 3, 4)):
    """Conv weights stored as (27, Cin, Cout) with tap order kd*9+kh*3+kw (DHWIO)."""
    params = []
    cin = in_channels
    for dil in dilation_lists:
        key, *ks = jax.random.split(key, 9)
        scale = 1.0 / jnp.sqrt(27.0 * cin)
        p = {
            'dilation': int(dil),
            'w': scale * jax.random.normal(ks[0], (27, cin, out_channels), jnp.float32),
            'b': 0.1 * jax.random.normal(ks[1], (out_channels,), jnp.float32),
            'gamma': 1.0 + 0.1 * jax.random.normal(ks[2], (out_channels,), jnp.float32),
            'beta': 0.1 * jax.random.normal(ks[3], (out_channels,), jnp.float32),
        }
        if cin != out_channels:   # first block: conv3x3(pad=1) + InstanceNorm shortcut
            p['w_sc'] = scale * jax.random.normal(ks[4], (27, cin, out_channels), jnp.float32)
            p['b_sc'] = 0.1 * jax.random.normal(ks[5], (out_channels,), jnp.float32)
            p['gamma_sc'] = 1.0 + 0.1 * jax.random.normal(ks[6], (out_channels,), jnp.float32)
            p['beta_sc'] = 0.1 * jax.random.normal(ks[7], (out_channels,), jnp.float32)
        params.append(p)
        cin = out_channels
    return params


# ------------------------------ pure-JAX reference -----------------------------
def _ref_instnorm(x, gamma, beta):  # x: NDHWC
    mean = jnp.mean(x, axis=(1, 2, 3), keepdims=True)
    var = jnp.mean((x - mean) ** 2, axis=(1, 2, 3), keepdims=True)
    return ((x - mean) * lax.rsqrt(var + EPS) * gamma.reshape(1, 1, 1, 1, -1)
            + beta.reshape(1, 1, 1, 1, -1))


def _ref_block(x, p):  # x: NDHWC
    cin, cout = p['w'].shape[1], p['w'].shape[2]
    dn = ('NDHWC', 'DHWIO', 'NDHWC')
    d = p['dilation']
    out = lax.conv_general_dilated(x, p['w'].reshape(3, 3, 3, cin, cout),
                                   window_strides=(1, 1, 1), padding=[(d, d)] * 3,
                                   rhs_dilation=(d, d, d), dimension_numbers=dn)
    out = _ref_instnorm(out + p['b'].reshape(1, 1, 1, 1, -1), p['gamma'], p['beta'])
    if 'w_sc' in p:
        sc = lax.conv_general_dilated(x, p['w_sc'].reshape(3, 3, 3, cin, cout),
                                      window_strides=(1, 1, 1), padding=[(1, 1)] * 3,
                                      dimension_numbers=dn)
        sc = _ref_instnorm(sc + p['b_sc'].reshape(1, 1, 1, 1, -1),
                           p['gamma_sc'], p['beta_sc'])
    else:
        sc = x
    return jnp.maximum(out + sc, 0.0)


def reference_forward(x_ncdhw, params_list):
    x = jnp.transpose(x_ncdhw, (0, 2, 3, 4, 1)).astype(jnp.float32)
    for p in params_list:
        x = _ref_block(x, p)
    return jnp.transpose(x, (0, 4, 1, 2, 3))


# ------------------------------------ main -------------------------------------
if __name__ == "__main__":
    key = jax.random.PRNGKey(0)
    k_x, k_p, k_p2 = jax.random.split(key, 3)

    N, Cin, Cout, D, H, W = 2, 4, 8, 8, 8, 8
    x = jax.random.normal(k_x, (N, Cin, D, H, W), jnp.float32)
    params = init_block_params(k_p, Cin, Cout, dilation_lists=(1, 2, 3, 4))

    ref = jax.block_until_ready(reference_forward(x, params))

    # 1) f32 path, auto spatial tile (single tile at this size)
    out = jax.block_until_ready(dilated_block_forward(x, params))
    assert out.shape == (N, Cout, D, H, W), out.shape
    err = float(jnp.max(jnp.abs(out - ref)))
    assert jnp.allclose(out, ref, rtol=1e-3, atol=1e-3), f"f32 max abs err {err}"

    # 2) f32 path, forced multi-tile spatial pipeline (exercises the tiled
    #    accumulation + last-tile InstanceNorm finalize)
    out_t = jax.block_until_ready(dilated_block_forward(x, params, s_tile=128))
    err_t = float(jnp.max(jnp.abs(out_t - ref)))
    assert jnp.allclose(out_t, ref, rtol=1e-3, atol=1e-3), f"tiled max abs err {err_t}"

    # 3) bf16 matmul inputs (v6e/v7x fast path), f32 accumulation / normalization.
    #    Tolerance reflects bf16 input rounding through 4 stacked blocks.
    out_bf = jax.block_until_ready(
        dilated_block_forward(x, params, matmul_dtype=jnp.bfloat16))
    err_bf = float(jnp.max(jnp.abs(out_bf - ref)))
    assert jnp.allclose(out_bf, ref, rtol=1e-1, atol=1e-1), f"bf16 max abs err {err_bf}"

    # 4) first block with dilation != 1: shortcut conv uses different (dil=1)
    #    columns -> exercises the block-diagonal fused-weight path.
    params2 = init_block_params(k_p2, Cin, Cout, dilation_lists=(2, 3))
    ref2 = jax.block_until_ready(reference_forward(x, params2))
    out2 = jax.block_until_ready(dilated_block_forward(x, params2))
    err2 = float(jnp.max(jnp.abs(out2 - ref2)))
    assert jnp.allclose(out2, ref2, rtol=1e-3, atol=1e-3), f"dil!=1 max abs err {err2}"

    print("KERNEL_OK")
</pallas_src>

<mosaic_0001>
module attributes {stable_mosaic.version = 11 : i64} {
  func.func @kernel(%arg0: i32, %arg1: i32, %arg2: memref<1x108x512xf32, #tpu.memory_space<vmem>>, %arg3: memref<16x108xf32, #tpu.memory_space<vmem>>, %arg4: memref<16x1xf32, #tpu.memory_space<vmem>>, %arg5: memref<16x1xf32, #tpu.memory_space<vmem>>, %arg6: memref<1x8x512xf32, #tpu.memory_space<vmem>>, %arg7: memref<16x512xf32, #tpu.memory_space<vmem>>) attributes {dimension_semantics = [#tpu.dimension_semantics<parallel>, #tpu.dimension_semantics<arbitrary>], iteration_bounds = array<i64: 2, 1>, scalar_prefetch = 0 : i64, scratch_operands = 1 : i64, tpu.core_type = #tpu.core_type<tc>, window_params = [{transform_indices = @transform_0, window_bounds = array<i64: 1, 108, 512>}, {pipeline_mode = #tpu.pipeline_mode<synchronous>, transform_indices = @transform_1, window_bounds = array<i64: 16, 108>}, {pipeline_mode = #tpu.pipeline_mode<synchronous>, transform_indices = @transform_2, window_bounds = array<i64: 16, 1>}, {pipeline_mode = #tpu.pipeline_mode<synchronous>, transform_indices = @transform_3, window_bounds = array<i64: 16, 1>}, {transform_indices = @transform_4, window_bounds = array<i64: 1, 8, 512>}]} {
    %c512_i32 = arith.constant 512 : i32
    %0 = arith.muli %arg1, %c512_i32 : i32
    %1 = tpu.assume_multiple %0, 512 : i32
    %c0 = arith.constant 0 : index
    %c0_0 = arith.constant 0 : index
    %2 = vector.load %arg3[%c0, %c0_0] : memref<16x108xf32, #tpu.memory_space<vmem>>, vector<16x108xf32>
    %c0_1 = arith.constant 0 : index
    %c0_2 = arith.constant 0 : index
    %c0_3 = arith.constant 0 : index
    %3 = vector.load %arg2[%c0_1, %c0_2, %c0_3] : memref<1x108x512xf32, #tpu.memory_space<vmem>>, vector<1x108x512xf32>
    %4 = vector.shape_cast %3 : vector<1x108x512xf32> to vector<108x512xf32>
    %cst = arith.constant dense<0.000000e+00> : vector<16x512xf32>
    %5 = tpu.matmul %2, %4, %cst {dimension_numbers = #tpu.dot_dimension_numbers<[1], [0], [0], [1], [0, 0, 1, 1], [], []>} : vector<16x108xf32>, vector<108x512xf32>, vector<16x512xf32> -> vector<16x512xf32>
    %c0_4 = arith.constant 0 : index
    %6 = arith.index_cast %1 : i32 to index
    %7 = vector.load %arg7[%c0_4, %6] : memref<16x512xf32, #tpu.memory_space<vmem>>, vector<16x512xf32>
    tpu.vector_store %arg7[%c0_4, %6], %5 {strides = array<i32>} : memref<16x512xf32, #tpu.memory_space<vmem>>, vector<16x512xf32>,
    %c0_i32 = arith.constant 0 : i32
    %8 = arith.cmpi eq, %arg1, %c0_i32 : i32
    %9 = arith.extui %8 : i1 to i32
    %c0_i32_5 = arith.constant 0 : i32
    %10 = arith.cmpi ne, %9, %c0_i32_5 : i32
    scf.if %10 {
      %c0_6 = arith.constant 0 : index
      %c0_7 = arith.constant 0 : index
      %11 = vector.load %arg7[%c0_6, %c0_7] : memref<16x512xf32, #tpu.memory_space<vmem>>, vector<8x512xf32>
      %c0_8 = arith.constant 0 : index
      %c0_9 = arith.constant 0 : index
      %12 = vector.load %arg4[%c0_8, %c0_9] : memref<16x1xf32, #tpu.memory_space<vmem>>, vector<8x1xf32>
      %c0_10 = arith.constant 0 : index
      %c0_11 = arith.constant 0 : index
      %13 = vector.load %arg5[%c0_10, %c0_11] : memref<16x1xf32, #tpu.memory_space<vmem>>, vector<8x1xf32>
      %cst_12 = arith.constant dense<0.000000e+00> : vector<8xf32>
      %14 = vector.multi_reduction <add>, %11, %cst_12 [1] : vector<8x512xf32> to vector<8xf32>
      %15 = vector.shape_cast %14 : vector<8xf32> to vector<8x1xf32>
      %cst_13 = arith.constant 5.120000e+02 : f32
      %16 = vector.broadcast %cst_13 : f32 to vector<8x1xf32>
      %17 = arith.divf %15, %16 : vector<8x1xf32>
      %18 = vector.broadcast %17 : vector<8x1xf32> to vector<8x512xf32>
      %19 = arith.subf %11, %18 : vector<8x512xf32>
      %20 = arith.mulf %19, %19 : vector<8x512xf32>
      %cst_14 = arith.constant dense<0.000000e+00> : vector<8xf32>
      %21 = vector.multi_reduction <add>, %20, %cst_14 [1] : vector<8x512xf32> to vector<8xf32>
      %22 = vector.shape_cast %21 : vector<8xf32> to vector<8x1xf32>
      %cst_15 = arith.constant 5.120000e+02 : f32
      %23 = vector.broadcast %cst_15 : f32 to vector<8x1xf32>
      %24 = arith.divf %22, %23 : vector<8x1xf32>
      %cst_16 = arith.constant 9.99999974E-6 : f32
      %25 = vector.broadcast %cst_16 : f32 to vector<8x1xf32>
      %26 = arith.addf %24, %25 : vector<8x1xf32>
      %27 = math.rsqrt %26 : vector<8x1xf32>
      %28 = arith.mulf %12, %27 : vector<8x1xf32>
      %29 = vector.broadcast %28 : vector<8x1xf32> to vector<8x512xf32>
      %30 = arith.mulf %11, %29 : vector<8x512xf32>
      %31 = arith.mulf %17, %28 : vector<8x1xf32>
      %32 = arith.subf %13, %31 : vector<8x1xf32>
      %33 = vector.broadcast %32 : vector<8x1xf32> to vector<8x512xf32>
      %34 = arith.addf %30, %33 : vector<8x512xf32>
      %c8 = arith.constant 8 : index
      %c0_17 = arith.constant 0 : index
      %35 = vector.load %arg7[%c8, %c0_17] : memref<16x512xf32, #tpu.memory_space<vmem>>, vector<8x512xf32>
      %c8_18 = arith.constant 8 : index
      %c0_19 = arith.constant 0 : index
      %36 = vector.load %arg4[%c8_18, %c0_19] : memref<16x1xf32, #tpu.memory_space<vmem>>, vector<8x1xf32>
      %c8_20 = arith.constant 8 : index
      %c0_21 = arith.constant 0 : index
      %37 = vector.load %arg5[%c8_20, %c0_21] : memref<16x1xf32, #tpu.memory_space<vmem>>, vector<8x1xf32>
      %cst_22 = arith.constant dense<0.000000e+00> : vector<8xf32>
      %38 = vector.multi_reduction <add>, %35, %cst_22 [1] : vector<8x512xf32> to vector<8xf32>
      %39 = vector.shape_cast %38 : vector<8xf32> to vector<8x1xf32>
      %cst_23 = arith.constant 5.120000e+02 : f32
      %40 = vector.broadcast %cst_23 : f32 to vector<8x1xf32>
      %41 = arith.divf %39, %40 : vector<8x1xf32>
      %42 = vector.broadcast %41 : vector<8x1xf32> to vector<8x512xf32>
      %43 = arith.subf %35, %42 : vector<8x512xf32>
      %44 = arith.mulf %43, %43 : vector<8x512xf32>
      %cst_24 = arith.constant dense<0.000000e+00> : vector<8xf32>
      %45 = vector.multi_reduction <add>, %44, %cst_24 [1] : vector<8x512xf32> to vector<8xf32>
      %46 = vector.shape_cast %45 : vector<8xf32> to vector<8x1xf32>
      %cst_25 = arith.constant 5.120000e+02 : f32
      %47 = vector.broadcast %cst_25 : f32 to vector<8x1xf32>
      %48 = arith.divf %46, %47 : vector<8x1xf32>
      %cst_26 = arith.constant 9.99999974E-6 : f32
      %49 = vector.broadcast %cst_26 : f32 to vector<8x1xf32>
      %50 = arith.addf %48, %49 : vector<8x1xf32>
      %51 = math.rsqrt %50 : vector<8x1xf32>
      %52 = arith.mulf %36, %51 : vector<8x1xf32>
      %53 = vector.broadcast %52 : vector<8x1xf32> to vector<8x512xf32>
      %54 = arith.mulf %35, %53 : vector<8x512xf32>
      %55 = arith.mulf %41, %52 : vector<8x1xf32>
      %56 = arith.subf %37, %55 : vector<8x1xf32>
      %57 = vector.broadcast %56 : vector<8x1xf32> to vector<8x512xf32>
      %58 = arith.addf %54, %57 : vector<8x512xf32>
      %59 = arith.addf %34, %58 : vector<8x512xf32>
      %cst_27 = arith.constant 0.000000e+00 : f32
      %60 = vector.broadcast %cst_27 : f32 to vector<8x512xf32>
      %61 = arith.maximumf %59, %60 : vector<8x512xf32>
      %c0_28 = arith.constant 0 : index
      %c0_29 = arith.constant 0 : index
      %c0_30 = arith.constant 0 : index
      %62 = vector.load %arg6[%c0_28, %c0_29, %c0_30] : memref<1x8x512xf32, #tpu.memory_space<vmem>>, vector<1x8x512xf32>
      %63 = vector.shape_cast %62 : vector<1x8x512xf32> to vector<8x512xf32>
      %64 = vector.shape_cast %61 : vector<8x512xf32> to vector<1x8x512xf32>
      tpu.vector_store %arg6[%c0_28, %c0_29, %c0_30], %64 {strides = array<i32>} : memref<1x8x512xf32, #tpu.memory_space<vmem>>, vector<1x8x512xf32>,
    } else {
    }
    return
  }
  func.func @transform_0(%arg0: i32, %arg1: i32) -> (i32, i32, i32) {
    %c0_i32 = arith.constant 0 : i32
    %c0_i32_0 = arith.constant 0 : i32
    return %arg0, %c0_i32, %arg1 : i32, i32, i32
  }
  func.func @transform_1(%arg0: i32, %arg1: i32) -> (i32, i32) {
    %c0_i32 = arith.constant 0 : i32
    %c0_i32_0 = arith.constant 0 : i32
    %c0_i32_1 = arith.constant 0 : i32
    return %c0_i32, %c0_i32_0 : i32, i32
  }
  func.func @transform_2(%arg0: i32, %arg1: i32) -> (i32, i32) {
    %c0_i32 = arith.constant 0 : i32
    %c0_i32_0 = arith.constant 0 : i32
    %c0_i32_1 = arith.constant 0 : i32
    return %c0_i32, %c0_i32_0 : i32, i32
  }
  func.func @transform_3(%arg0: i32, %arg1: i32) -> (i32, i32) {
    %c0_i32 = arith.constant 0 : i32
    %c0_i32_0 = arith.constant 0 : i32
    %c0_i32_1 = arith.constant 0 : i32
    return %c0_i32, %c0_i32_0 : i32, i32
  }
  func.func @transform_4(%arg0: i32, %arg1: i32) -> (i32, i32, i32) {
    %c0_i32 = arith.constant 0 : i32
    %c0_i32_0 = arith.constant 0 : i32
    %c0_i32_1 = arith.constant 0 : i32
    return %arg0, %c0_i32, %c0_i32_0 : i32, i32, i32
  }
}

</mosaic_0001>

<bundles_post_ra>
// kernel: tpu_custom_call.1
= control target key start
LH: loop header
LB: loop body
LE: loop exit
PB: predicated region body
PF: predicated region fallthrough
CT: control target
= control target key end

     0   :  { %9 = vsyncpa [#allocation4], 0  ;;  %s1062_s0 = inlined_call_operand.vmem [shape: f32[2,108,512], index: 0, kind: input, shape index: {}]   ;;  %s1063_s1 = inlined_call_operand.vmem [shape: f32[16,108], index: 1, kind: input, shape index: {}]   ;;  %s1064_s2 = inlined_call_operand.vmem [shape: f32[16,1], index: 2, kind: input, shape index: {}]   ;;  %s1065_s3 = inlined_call_operand.vmem [shape: f32[16,1], index: 3, kind: input, shape index: {}]   ;;  %s1066_s4 = inlined_call_operand.hbm [shape: f32[2,8,512], index: 4, kind: output, shape index: {}]  }
   0x1   :  { %11 = vsyncpa [#allocation4 + $0x1], 0  ;;  %s837_s15 = smov 0   ;;  %s839_s16 = smov 0  }
   0x2   :  { %s841_s17 = smov 0   ;;  %s843_s18 = smov 0  }
   0x3   :  { %s845_s19 = smov 0   ;;  %s847_s20 = smov 0  }
   0x4 LB: > { %s638_s21 = sadd.s32 4294967295, %s808_s20   ;;  %s639_s22 = sadd.s32 4294967294, %s808_s20   ;;  %s808_s20 = sphi %s847_s20, %s17_s20   ;;  %s804_s19 = sphi %s845_s19, %s1073_s19   ;;  %s800_s18 = sphi %s843_s18, %s1072_s18   ;;  %s796_s17 = sphi %s841_s17, %s1071_s17   ;;  %s792_s16 = sphi %s839_s16, %s1070_s16   ;;  %s788_s15 = sphi %s837_s15, %s1069_s15  }
   0x5   : > { %s29_s23 = sadd.s32 1, %s804_s19  ;;  %s127_s24 = sadd.s32 1, %s796_s17 }
   0x6   : > { %p31_p0 = scmp.ge.s32.totalorder %s29_s23, 2  ;;  %p137_p1 = scmp.ne.s32.totalorder %s796_s17, %s792_s16 }
   0x7   : > { %p138_p2 = scmp.eq.s32.totalorder %s638_s21, 1  ;;  %p143_p3 = scmp.ne.s32.totalorder %s792_s16, %s788_s15 }
   0x8   : > { %s1075_s23 = smov (%p31_p0, %s29_s23), 0  ;;  %p144_p5 = scmp.eq.s32.totalorder %s639_s22, 1 }
   0x9   : > { %p877_p4 = por %p138_p2, %p137_p1  ;;  %s124_s26 = ssub.s32 %s804_s19, %s1075_s23 }
   0xa   : > { %p642_p6 = scmp.ge.s32.totalorder %s808_s20, 1  ;;  %p125_p7 = scmp.eq.s32.totalorder %s124_s26, 0 }
   0xb   : > { %p884_p8 = por %p144_p5, %p143_p3  ;;  %p184_p9 = scmp.lt.s32.totalorder %s808_s20, 3 }
   0xc   : > { %s890_s28 = scalar_select %p125_p7, %s796_s17, %s127_s24  }
   0xd   : > { %p185_p10 = pnand %p642_p6, %p184_p9 }
   0xe   : > { %p215_p11 = scmp.lt.s32.totalorder (!%p185_p10), %s800_s18, 1  ;;  %s662_s6 = sshll.u32 (!%p185_p10), %s800_s18, 5 }
   0xf   : > { %188 = sbr.rel (%p185_p10) target bundleno = 596 (0x254), region = 36  ;;  %s558_s9 = scalar_lea.hbm (!%p185_p10), %s1066_s4, %s662_s6 }
  0x10   : > { %s562_s11 = sshll.u32 (!%p185_p10), %s558_s9, 4  ;;  %s750_s24 = scalar_lea.hbm (!%p185_p10), %s1066_s4, 64  ;;  %s563_s11 = int_to_ptr.hbm [resolvable:$true] %s562_s11 }
  0x11   : > { %s744_s13 = sshra.s32 (!%p185_p10), %s563_s11, 4  ;;  %s745_s13 = int_to_ptr.hbm [resolvable:$true] %s744_s13 }
  0x12   : > { %s746_s14 = scalar_lea.hbm (!%p185_p10), %s745_s13, 32  ;;  %p751_p1 = scmp.lt.s32.totalorder (!%p185_p10), %s745_s13, %s1066_s4 }
  0x13   : > { %p747_p12 = scmp.ne.s32.totalorder (!%p185_p10), %s745_s13, %s746_s14  ;;  %p752_p2 = scmp.lt.s32.totalorder (!%p185_p10), %s750_s24, %s746_s14 }
  0x14   : > { %s216_s29 = scalar_select %p215_p11, %s800_s18, 1  ;;  %vm290_vm0 = vcmask 1043456   ;;  %v225_v54 = vld [vmem:[%s1063_s1] sm:$0xff]  ;;  %vm283_vm1 = vcmask 883712   ;;  %v226_v57 = vld [vmem:[%s1063_s1 + $0x8] sm:$0xff] }
  0x15   : > { %p748_p13 = pnand %p747_p12, %p877_p4  ;;  %p753_p3 = por %p752_p2, %p751_p1 }
  0x16   : > { %s663_s30 = smul.u32 448, %s216_s29 }
  0x17   : > { %p749_p0 = pneg %p748_p13 }
  0x18   : > { %s897_s7 = scalar_lea.vmem %s1062_s0, %s663_s30  ;;  %s211_s30 = sand.u32 1, %s792_s16  }
  0x19   : > { %v281_v0 = vld [vmem:[%s897_s7 + $0x1b0] sm:$0xf]  ;;  %v282_v2 = vld [vmem:[%s897_s7 + $0x1b8] sm:$0xf]  ;;  %v279_v3 = vld [vmem:[%s897_s7 + $0x1a0] sm:$0xf]  ;;  %p754_p5 = pnand %p753_p3, %p749_p0 }
  0x1a   : > { %v277_v1 = vld [vmem:[%s897_s7 + $0x190] sm:$0xff]  ;;  %651 = vmatpush.msk.msra.mxu2 %vm290_vm0, %v281_v0  ;;  %654 = vmatpush.msk.msra.mxu3 %vm290_vm0, %v282_v2  ;;  %v280_v4 = vld [vmem:[%s897_s7 + $0x1a8] sm:$0xf]  ;;  %v278_v6 = vld [vmem:[%s897_s7 + $0x198] sm:$0xff]  ;;  %s643_s5 = sshll.u32 %s211_s30, 5  ;;  %s547_s12 = scalar_lea.sflag [#allocation4], %s211_s30 }
  0x1b   : > { %v273_v5 = vld [vmem:[%s897_s7 + $0x170] sm:$0xff]  ;;  %645 = vmatpush.msk.msra.mxu0 %vm290_vm0, %v279_v3  ;;  %648 = vmatpush.msk.msra.mxu1 %vm290_vm0, %v280_v4  ;;  %v275_v7 = vld [vmem:[%s897_s7 + $0x180] sm:$0xff]  ;;  %v276_v8 = vld [vmem:[%s897_s7 + $0x188] sm:$0xff]  ;;  %s213_s18 = scalar_lea.vmem [#allocation3], %s643_s5 }
  0x1c   : > { %352 = vmatpush.msra.mxu2 %v277_v1  ;;  %375 = vmatpush.msra.mxu3 %v278_v6  ;;  %v274_v9 = vld [vmem:[%s897_s7 + $0x178] sm:$0xff]  ;;  %v271_v10 = vld [vmem:[%s897_s7 + $0x160] sm:$0xff]  ;;  %v269_v11 = vld [vmem:[%s897_s7 + $0x150] sm:$0xff]  ;;  %s560_s10 = sshll.u32 %s213_s18, 4  ;;  %s561_s10 = int_to_ptr.vmem [resolvable:$true] %s560_s10 }
  0x1d   : > { %306 = vmatpush.msra.mxu0 %v275_v7  ;;  %329 = vmatpush.msra.mxu1 %v276_v8  ;;  %v272_v12 = vld [vmem:[%s897_s7 + $0x168] sm:$0xff]  ;;  %v270_v13 = vld [vmem:[%s897_s7 + $0x158] sm:$0xff]  ;;  %v267_v14 = vld [vmem:[%s897_s7 + $0x140] sm:$0xff]  ;;  %v810_v8 = vmov 512.0  }
  0x1e   : > { %353 = vmatpush.msra.mxu2 %v273_v5  ;;  %376 = vmatpush.msra.mxu3 %v274_v9  ;;  %v268_v15 = vld [vmem:[%s897_s7 + $0x148] sm:$0xff]  ;;  %v265_v16 = vld [vmem:[%s897_s7 + $0x130] sm:$0xff]  ;;  %v266_v17 = vld [vmem:[%s897_s7 + $0x138] sm:$0xff]  ;;  %724 = vrcp.f32 %v810_v8 }
  0x1f   : > { %307 = vmatpush.msra.mxu0 %v271_v10  ;;  %330 = vmatpush.msra.mxu1 %v272_v12  ;;  %v263_v18 = vld [vmem:[%s897_s7 + $0x120] sm:$0xff]  ;;  %v264_v19 = vld [vmem:[%s897_s7 + $0x128] sm:$0xff]  ;;  %v261_v20 = vld [vmem:[%s897_s7 + $0x110] sm:$0xff] }
  0x20   : > { %354 = vmatpush.msra.mxu2 %v269_v11  ;;  %377 = vmatpush.msra.mxu3 %v270_v13  ;;  %v262_v21 = vld [vmem:[%s897_s7 + $0x118] sm:$0xff]  ;;  %v259_v22 = vld [vmem:[%s897_s7 + $0x100] sm:$0xff]  ;;  %v260_v23 = vld [vmem:[%s897_s7 + $0x108] sm:$0xff] }
  0x21   : > { %308 = vmatpush.msra.mxu0 %v267_v14  ;;  %331 = vmatpush.msra.mxu1 %v268_v15  ;;  %v257_v24 = vld [vmem:[%s897_s7 + $0xf0] sm:$0xff]  ;;  %v258_v25 = vld [vmem:[%s897_s7 + $0xf8] sm:$0xff]  ;;  %v255_v26 = vld [vmem:[%s897_s7 + $0xe0] sm:$0xff] }
  0x22   : > { %355 = vmatpush.msra.mxu2 %v265_v16  ;;  %378 = vmatpush.msra.mxu3 %v266_v17  ;;  %v256_v27 = vld [vmem:[%s897_s7 + $0xe8] sm:$0xff]  ;;  %v253_v28 = vld [vmem:[%s897_s7 + $0xd0] sm:$0xff]  ;;  %v254_v29 = vld [vmem:[%s897_s7 + $0xd8] sm:$0xff] }
  0x23   : > { %309 = vmatpush.msra.mxu0 %v263_v18  ;;  %332 = vmatpush.msra.mxu1 %v264_v19  ;;  %v251_v30 = vld [vmem:[%s897_s7 + $0xc0] sm:$0xff]  ;;  %v252_v31 = vld [vmem:[%s897_s7 + $0xc8] sm:$0xff]  ;;  %v249_v32 = vld [vmem:[%s897_s7 + $0xb0] sm:$0xff] }
  0x24   : > { %356 = vmatpush.msra.mxu2 %v261_v20  ;;  %379 = vmatpush.msra.mxu3 %v262_v21  ;;  %v250_v33 = vld [vmem:[%s897_s7 + $0xb8] sm:$0xff]  ;;  %v247_v34 = vld [vmem:[%s897_s7 + $0xa0] sm:$0xff]  ;;  %v248_v35 = vld [vmem:[%s897_s7 + $0xa8] sm:$0xff]  ;;  %v725_v9 = vpop.eup %724 }
  0x25   : > { %310 = vmatpush.msra.mxu0 %v259_v22  ;;  %333 = vmatpush.msra.mxu1 %v260_v23  ;;  %v245_v36 = vld [vmem:[%s897_s7 + $0x90] sm:$0xff]  ;;  %v246_v37 = vld [vmem:[%s897_s7 + $0x98] sm:$0xff]  ;;  %v243_v38 = vld [vmem:[%s897_s7 + $0x80] sm:$0xff]  ;;  %v423_v10 = vmul.f32 512.0, %v725_v9  ;;  %vm427_vm2 = vweird.f32 %v725_v9 }
  0x26   : > { %357 = vmatpush.msra.mxu2 %v257_v24  ;;  %380 = vmatpush.msra.mxu3 %v258_v25  ;;  %v244_v39 = vld [vmem:[%s897_s7 + $0x88] sm:$0xff]  ;;  %v241_v40 = vld [vmem:[%s897_s7 + $0x70] sm:$0xff]  ;;  %v242_v41 = vld [vmem:[%s897_s7 + $0x78] sm:$0xff] }
  0x27   : > { %311 = vmatpush.msra.mxu0 %v255_v26  ;;  %334 = vmatpush.msra.mxu1 %v256_v27  ;;  %v239_v42 = vld [vmem:[%s897_s7 + $0x60] sm:$0xff]  ;;  %v240_v43 = vld [vmem:[%s897_s7 + $0x68] sm:$0xff]  ;;  %v237_v44 = vld [vmem:[%s897_s7 + $0x50] sm:$0xff]  ;;  %v424_v11 = vsub.f32 1.0, %v423_v10 }
  0x28   : > { %358 = vmatpush.msra.mxu2 %v253_v28  ;;  %381 = vmatpush.msra.mxu3 %v254_v29  ;;  %v238_v45 = vld [vmem:[%s897_s7 + $0x58] sm:$0xff]  ;;  %v235_v46 = vld [vmem:[%s897_s7 + $0x40] sm:$0xff]  ;;  %v236_v47 = vld [vmem:[%s897_s7 + $0x48] sm:$0xff] }
  0x29   : > { %312 = vmatpush.msra.mxu0 %v251_v30  ;;  %335 = vmatpush.msra.mxu1 %v252_v31  ;;  %v233_v48 = vld [vmem:[%s897_s7 + $0x30] sm:$0xff]  ;;  %v234_v49 = vld [vmem:[%s897_s7 + $0x38] sm:$0xff]  ;;  %v231_v50 = vld [vmem:[%s897_s7 + $0x20] sm:$0xff]  ;;  %v425_v12 = vmul.f32 %v725_v9, %v424_v11 }
  0x2a   : > { %359 = vmatpush.msra.mxu2 %v249_v32  ;;  %382 = vmatpush.msra.mxu3 %v250_v33  ;;  %v232_v51 = vld [vmem:[%s897_s7 + $0x28] sm:$0xff]  ;;  %v229_v52 = vld [vmem:[%s897_s7 + $0x10] sm:$0xff]  ;;  %v230_v53 = vld [vmem:[%s897_s7 + $0x18] sm:$0xff] }
  0x2b   : > { %313 = vmatpush.msra.mxu0 %v247_v34  ;;  %336 = vmatpush.msra.mxu1 %v248_v35  ;;  %v227_v55 = vld [vmem:[%s897_s7] sm:$0xff]  ;;  %v228_v56 = vld [vmem:[%s897_s7 + $0x8] sm:$0xff]  ;;  %v426_v13 = vadd.f32 %v725_v9, %v425_v12 }
  0x2c   : > { %360 = vmatpush.msra.mxu2 %v245_v36  ;;  %383 = vmatpush.msra.mxu3 %v246_v37 }
  0x2d   : > { %314 = vmatpush.msra.mxu0 %v243_v38  ;;  %337 = vmatpush.msra.mxu1 %v244_v39  ;;  %v428_v14 = vsel %vm427_vm2, %v725_v9, %v426_v13  ;;  %v480_v9 = vld [vmem:[%s1064_s2 + $0x8] sm:$0xff] }
  0x2e   : > { %361 = vmatpush.msra.mxu2 %v241_v40  ;;  %384 = vmatpush.msra.mxu3 %v242_v41  ;;  %v811_v41 = vmov 0   ;;  %v481_v13 = vld [vmem:[%s1065_s3 + $0x8] sm:$0xff] }
  0x2f   : > { %315 = vmatpush.msra.mxu0 %v239_v42  ;;  %338 = vmatpush.msra.mxu1 %v240_v43 }
  0x30   : > { %362 = vmatpush.msra.mxu2 %v237_v44  ;;  %385 = vmatpush.msra.mxu3 %v238_v45 }
  0x31   : > { %316 = vmatpush.msra.mxu0 %v235_v46  ;;  %339 = vmatpush.msra.mxu1 %v236_v47 }
  0x32   : > { %363 = vmatpush.msra.mxu2 %v233_v48  ;;  %386 = vmatpush.msra.mxu3 %v234_v49 }
  0x33   : > { %317 = vmatpush.msra.mxu0 %v231_v50  ;;  %340 = vmatpush.msra.mxu1 %v232_v51 }
  0x34   : > { %364 = vmatpush.msra.mxu2 %v229_v52  ;;  %387 = vmatpush.msra.mxu3 %v230_v53 }
  0x35   : > { %652 = vmatmul.msk.f32.vlgmr.msra.gmra.mxu2 %vm283_vm1, %v225_v54  ;;  %655 = vmatmul.msk.f32.vlgmr.msra.gmra.mxu3 %vm283_vm1, %v225_v54 }
  0x36   : > { %318 = vmatpush.msra.mxu0 %v227_v55  ;;  %341 = vmatpush.msra.mxu1 %v228_v56  ;;  %v415_v55 = vld [vmem:[%s1064_s2] sm:$0xff] }
  0x37   : > { %646 = vmatmul.msk.f32.vlgmr.msra.gmra.mxu0 %vm283_vm1, %v225_v54  ;;  %649 = vmatmul.msk.f32.vlgmr.msra.gmra.mxu1 %vm283_vm1, %v225_v54 }
  0x38   : > { %721 = vset.pattern.permute.xlu2 %v811_v41  ;;  %722 = vset.pattern.permute.xlu0 %v811_v41 }
  0x39   : > { %723 = vset.pattern.permute.xlu1 %v811_v41 }
  0x3d   : > { %653 = vmatmul.msk.f32.gmra.mxu2 %vm283_vm1, %v226_v57  ;;  %656 = vmatmul.msk.f32.gmra.mxu3 %vm283_vm1, %v226_v57 }
  0x3f   : > { %647 = vmatmul.msk.f32.gmra.mxu0 %vm283_vm1, %v226_v57  ;;  %650 = vmatmul.msk.f32.gmra.mxu1 %vm283_vm1, %v226_v57 }
  0xb4   : > { %v969_v58 = vpop.f32.mrf.mxu0  ;;  %v971_v59 = vpop.f32.mrf.mxu1 }
  0xb5   : > { %v417_v60 = vadd.f32 %v971_v59, %v969_v58 }
  0xb8   : > { %v975_v61 = vpop.f32.mrf.mxu2  ;;  %v977_v62 = vpop.f32.mrf.mxu3 }
  0xb9   : > { %v418_v63 = vadd.f32 %v417_v60, %v975_v61 }
  0xbb   : > { %v419_v0 = vadd.f32 %v418_v63, %v977_v62 }
  0xbc   : > { %v981_v1 = vpop.f32.mrf.mxu0  ;;  %v983_v2 = vpop.f32.mrf.mxu1 }
  0xbd   : > { %420 = vadd.xlane.f32.xlu0 %v419_v0  ;;  %v482_v3 = vadd.f32 %v983_v2, %v981_v1 }
  0xc0   : > { %v987_v4 = vpop.f32.mrf.mxu2  ;;  %v989_v5 = vpop.f32.mrf.mxu3 }
  0xc1   : > { %v483_v6 = vadd.f32 %v482_v3, %v987_v4  ;;  %v416_v3 = vld [vmem:[%s1065_s3] sm:$0xff] }
  0xc3   : > { %v484_v7 = vadd.f32 %v483_v6, %v989_v5 }
  0xc5   : > { %485 = vadd.xlane.f32.xlu0 %v484_v7 }
 0x130   : > { %v421_v15 = vpop.xlane.xlu0 %420 }
 0x131   : > { %v429_v16 = vmul.f32 %v428_v14, %v421_v15 }
 0x133   : > { %v430_v17 = vsub.f32 %v969_v58, %v429_v16  ;;  %v431_v18 = vsub.f32 %v971_v59, %v429_v16  ;;  %v432_v19 = vsub.f32 %v975_v61, %v429_v16  ;;  %v433_v20 = vsub.f32 %v977_v62, %v429_v16 }
 0x135   : > { %v434_v21 = vmul.f32 %v430_v17, %v430_v17  ;;  %v435_v22 = vmul.f32 %v431_v18, %v431_v18  ;;  %v436_v23 = vmul.f32 %v432_v19, %v432_v19  ;;  %v437_v27 = vmul.f32 %v433_v20, %v433_v20 }
 0x137   : > { %v438_v24 = vadd.f32 %v435_v22, %v434_v21 }
 0x138   : > { %v486_v25 = vpop.xlane.xlu0 %485 }
 0x139   : > { %v487_v26 = vmul.f32 %v486_v25, %v428_v14  ;;  %v439_v28 = vadd.f32 %v438_v24, %v436_v23 }
 0x13b   : > { %v440_v29 = vadd.f32 %v439_v28, %v437_v27  ;;  %v488_v30 = vsub.f32 %v981_v1, %v487_v26  ;;  %v489_v31 = vsub.f32 %v983_v2, %v487_v26  ;;  %v490_v32 = vsub.f32 %v987_v4, %v487_v26 }
 0x13c   : > { %v491_v33 = vsub.f32 %v989_v5, %v487_v26 }
 0x13d   : > { %441 = vadd.xlane.f32.xlu1 %v440_v29  ;;  %v492_v34 = vmul.f32 %v488_v30, %v488_v30  ;;  %v493_v35 = vmul.f32 %v489_v31, %v489_v31  ;;  %v494_v36 = vmul.f32 %v490_v32, %v490_v32 }
 0x13e   : > { %v495_v38 = vmul.f32 %v491_v33, %v491_v33 }
 0x13f   : > { %v496_v37 = vadd.f32 %v493_v35, %v492_v34 }
 0x141   : > { %v497_v39 = vadd.f32 %v496_v37, %v494_v36 }
 0x143   : > { %v498_v40 = vadd.f32 %v497_v39, %v495_v38 }
 0x145   : > { %499 = vadd.xlane.f32.xlu1 %v498_v40 }
 0x1b0   : > { %v442_v42 = vpop.xlane.xlu1 %441 }
 0x1b1   : > { %v443_v43 = vmul.f32 %v442_v42, %v428_v14 }
 0x1b3   : > { %v444_v44 = vadd.f32 1e-05, %v443_v43 }
 0x1b5   : > { %726 = vrsqrt.f32 %v444_v44  ;;  %vm451_vm4 = vweird.f32 %v444_v44 }
 0x1b8   : > { %v500_v45 = vpop.xlane.xlu1 %499 }
 0x1b9   : > { %v501_v46 = vmul.f32 %v500_v45, %v428_v14 }
 0x1bb   : > { %v727_v47 = vpop.eup %726  ;;  %v502_v48 = vadd.f32 1e-05, %v501_v46 }
 0x1bc   : > { %v446_v49 = vmul.f32 %v727_v47, %v444_v44  ;;  %vm452_vm3 = vweird.f32 %v727_v47 }
 0x1bd   : > { %728 = vrsqrt.f32 %v502_v48  ;;  %vm453_vm5 = vmor %vm451_vm4, %vm452_vm3  ;;  %vm509_vm7 = vweird.f32 %v502_v48 }
 0x1be   : > { %v447_v50 = vmul.f32 %v727_v47, %v446_v49 }
 0x1c0   : > { %v448_v51 = vmul.f32 0.5, %v447_v50 }
 0x1c2   : > { %v449_v52 = vsub.f32 1.5, %v448_v51 }
 0x1c3   : > { %v729_v53 = vpop.eup %728 }
 0x1c4   : > { %v504_v54 = vmul.f32 %v729_v53, %v502_v48  ;;  %v450_v56 = vmul.f32 %v727_v47, %v449_v52  ;;  %vm510_vm6 = vweird.f32 %v729_v53 }
 0x1c5   : > { %vm511_vm8 = vmor %vm509_vm7, %vm510_vm6 }
 0x1c6   : > { %v505_v57 = vmul.f32 %v729_v53, %v504_v54  ;;  %v454_v60 = vsel %vm453_vm5, %v727_v47, %v450_v56 }
 0x1c7   : > { %v455_v63 = vmul.f32 %v454_v60, %v415_v55 }
 0x1c8   : > { %v506_v0 = vmul.f32 0.5, %v505_v57 }
 0x1c9   : > { %458 = vperm.xlu2 %721, %v455_v63   ;;  %v465_v6 = vmul.f32 %v455_v63, %v429_v16 }
 0x1ca   : > { %v507_v7 = vsub.f32 1.5, %v506_v0 }
 0x1cb   : > { %v466_v8 = vsub.f32 %v416_v3, %v465_v6 }
 0x1cc   : > { %v508_v10 = vmul.f32 %v729_v53, %v507_v7 }
 0x1cd   : > { %469 = vperm.xlu0 %722, %v466_v8  }
 0x1ce   : > { %v512_v11 = vsel %vm511_vm8, %v729_v53, %v508_v10 }
 0x1cf   : > { %v513_v12 = vmul.f32 %v512_v11, %v480_v9 }
 0x1d1   : > { %516 = vperm.xlu2 %721, %v513_v12   ;;  %v523_v14 = vmul.f32 %v513_v12, %v487_v26 }
 0x1d3   : > { %v524_v15 = vsub.f32 %v481_v13, %v523_v14 }
 0x1d5   : > { %527 = vperm.xlu1 %723, %v524_v15  }
 0x223   : > { %v459_v16 = vpop.permute.xlu2 %458 }
 0x224   : > { %v461_v19 = vmul.f32 %v459_v16, %v969_v58  ;;  %v462_v20 = vmul.f32 %v459_v16, %v971_v59  ;;  %v463_v21 = vmul.f32 %v459_v16, %v975_v61  ;;  %v464_v22 = vmul.f32 %v459_v16, %v977_v62 }
 0x22b   : > { %v517_v17 = vpop.permute.xlu2 %516 }
 0x22c   : > { %v519_v23 = vmul.f32 %v517_v17, %v981_v1  ;;  %v520_v24 = vmul.f32 %v517_v17, %v983_v2  ;;  %v521_v25 = vmul.f32 %v517_v17, %v987_v4  ;;  %v522_v26 = vmul.f32 %v517_v17, %v989_v5 }
 0x23f   : > { %v470_v18 = vpop.permute.xlu0 %469 }
 0x240   : > { %v472_v27 = vadd.f32 %v470_v18, %v461_v19  ;;  %v473_v28 = vadd.f32 %v470_v18, %v462_v20  ;;  %v474_v58 = vadd.f32 %v470_v18, %v463_v21  ;;  %v475_v29 = vadd.f32 %v470_v18, %v464_v22 }
 0x247   : > { %v528_v59 = vpop.permute.xlu1 %527 }
 0x248   : > { %v530_v30 = vadd.f32 %v528_v59, %v519_v23  ;;  %v531_v61 = vadd.f32 %v528_v59, %v520_v24  ;;  %v532_v31 = vadd.f32 %v528_v59, %v521_v25  ;;  %v533_v62 = vadd.f32 %v528_v59, %v522_v26 }
 0x24a   : > { %v534_v1 = vadd.f32 %v530_v30, %v472_v27  ;;  %v535_v2 = vadd.f32 %v531_v61, %v473_v28  ;;  %v536_v4 = vadd.f32 %v532_v31, %v474_v58  ;;  %v537_v5 = vadd.f32 %v533_v62, %v475_v29 }
 0x24c   : > { %v538_v32 = vmax.f32 %v534_v1, 0.0  ;;  %v539_v33 = vmax.f32 %v535_v2, 0.0  ;;  %v540_v34 = vmax.f32 %v536_v4, 0.0  ;;  %v541_v35 = vmax.f32 %v537_v5, 0.0 }
 0x24e   : > { %542 = vst [vmem:[%s213_s18] sm:$0xff] %v538_v32 }
 0x24f   : > { %543 = vst [vmem:[%s213_s18 + $0x8] sm:$0xff] %v539_v33 }
 0x250   : > { %544 = vst [vmem:[%s213_s18 + $0x10] sm:$0xff] %v540_v34 }
 0x251   : > { %545 = vst [vmem:[%s213_s18 + $0x18] sm:$0xff] %v541_v35 }
 0x252   : > { %757 = shalt.err (!%p754_p5)
}
 0x253   : > { %664 = dma.vmem_to_hbm [thread:$0]  (%p877_p4), %s561_s10, 512, %s563_s11, %s547_s12  }
 0x254 PF: > { %p670_p6 = scmp.ge.s32.totalorder %s808_s20, 2  ;;  %s574_s30 = sand.u32 1, %s788_s15  }
 0x255   : > { %s575_s5 = scalar_lea.sflag [#allocation4], %s574_s30 }
 0x256   : > { %p667_p7 = pnand %p670_p6, %p884_p8 }
 0x258   : > { %p668_p9 = pneg %p667_p7 }
 0x25a   : > { %783 = dma.done.wait (%p668_p9), %s575_s5, 512  }
 0x25b   : > { %785 = vsyncadd (%p668_p9), %s575_s5, 4294966784  ;;  %s17_s20 = sadd.s32 1, %s808_s20   ;;  %s1069_s15 = smov %s792_s16 }
 0x25c   : > { %p14_p10 = scmp.ge.s32.totalorder %s17_s20, 4   ;;  %s1070_s16 = smov %s796_s17 }
 0x25d   : > { %s1071_s17 = smov %s890_s28  ;;  %s1072_s18 = smov %s804_s19 }
 0x25e   : > { %s1073_s19 = smov %s1075_s23  ;;  %16 = sbr.rel (!%p14_p10) target bundleno = 4 (0x4), region = 76 }
 0x263   :  { %581 = vsyncpa [#allocation4], 1 }
 0x264   :  { %583 = vsyncpa [#allocation4 + $0x1], 1 }

</bundles_post_ra>
